<compile_context>
chip_gen: v7x
topology: tpu7x:2x2x1
jax: 0.10.0
libtpu: 0.0.40
codegen_flags: <defaults>
</compile_context>

<pallas_src>
import functools
import math

import jax
import jax.numpy as jnp
from jax.experimental import pallas as pl
from jax.experimental.pallas import tpu as pltpu


def _round_up(x: int, mult: int) -> int:
    return ((x + mult - 1) // mult) * mult


def _vmem_capacity_bytes() -> int:
    """Physical per-TensorCore VMEM; conservative fallback = v7x (64 MiB)."""
    try:
        cap = getattr(pltpu.get_tpu_info(), "vmem_capacity_bytes", None)
        if cap:
            return int(cap)
    except Exception:
        pass
    return 64 * 2 ** 20


def _vmem_estimate(n: int, mp: int, tl: int, x_bytes: int, w_buffers: int) -> int:
    """Approximate VMEM footprint of one pallas_call step (bytes)."""
    two_mp = 2 * mp
    mats = 2 * two_mp * n * 2            # F + G bf16, single-buffered (Buffered(1))
    x_blk = 2 * n * tl * x_bytes         # input block, double-buffered
    o_blk = 2 * n * tl * 4               # f32 output block, double-buffered
    w_blk = w_buffers * two_mp * tl * 4  # f32 stacked filter weight
    y_scr = two_mp * tl * 2              # bf16 spectrum scratch
    temps = 2 * two_mp * tl * 4          # f32 forward-matmul result + filter temps
    return mats + x_blk + o_blk + w_blk + y_scr + temps


def _vmem_limit_bytes(estimate: int, cap: int) -> int:
    budget = int(cap * 0.85)             # leave headroom below physical VMEM
    want = int(estimate * 1.25) + (4 << 20)
    return int(min(max(want, 32 << 20), budget))


def _global_filter_kernel(x_ref, f_ref, g_ref, w_ref, o_ref, y_ref, *, mp):
    """One lane tile of the fused rfft -> complex filter -> irfft.

    x_ref: (N, TL)    f32/bf16 input slab (lanes = batch*dim fold, or a dim tile)
    f_ref: (2*MP, N)  bf16     stacked forward DFT  [Fr; Fi]
    g_ref: (N, 2*MP)  bf16     stacked inverse DFT  [Gr | Gi]
    w_ref: (2*MP, TL) f32      stacked filter weight [Wr; Wi] (zero in padded rows)
    o_ref: (N, TL)    f32      output slab
    y_ref: (2*MP, TL) bf16     VMEM scratch for the filtered spectrum [Yr; Yi]
    """
    x = x_ref[...].astype(jnp.bfloat16)
    # Forward rfft (ortho) as one stacked MXU matmul, f32 accumulation.
    xf = jnp.dot(f_ref[...], x, preferred_element_type=jnp.float32)
    xr = xf[:mp]
    xi = xf[mp:]

    w = w_ref[...]
    wr = w[:mp]
    wi = w[mp:]

    # Complex elementwise filter (VPU work, hides under the MXU critical path),
    # written straight into the two halves of the stacked bf16 scratch.
    y_ref[0:mp, :] = (xr * wr - xi * wi).astype(y_ref.dtype)
    y_ref[mp:2 * mp, :] = (xr * wi + xi * wr).astype(y_ref.dtype)

    # Inverse rfft (ortho) as the second stacked MXU matmul.
    o_ref[...] = jnp.dot(g_ref[...], y_ref[...],
                         preferred_element_type=jnp.float32).astype(o_ref.dtype)


def _build_dft_operators(n: int, m: int, mp: int):
    """Stacked real-valued rfft/irfft (ortho) operators, bf16, M padded to mp."""
    j = jnp.arange(n, dtype=jnp.float32)[None, :]          # (1, n) time index
    k = jnp.arange(m, dtype=jnp.float32)[:, None]          # (m, 1) freq index
    ang = 2.0 * math.pi * k * j / n                        # (m, n)
    scale = 1.0 / math.sqrt(n)

    # rfft, norm='ortho':  X[k] = (1/sqrt(n)) sum_j x[j] exp(-2*pi*i*j*k/n)
    fr = jnp.cos(ang) * scale                              # (m, n)
    fi = -jnp.sin(ang) * scale                             # (m, n)

    # irfft, norm='ortho', Hermitian completion: weight 2 on interior bins,
    # 1 at DC (and Nyquist when n is even).
    c = jnp.full((m, 1), 2.0, dtype=jnp.float32).at[0, 0].set(1.0)
    if n % 2 == 0:
        c = c.at[m - 1, 0].set(1.0)
    gr = (fr * c).T                                        # (n, m)
    gi = (fi * c).T                                        # (n, m)

    pad_r = ((0, mp - m), (0, 0))
    pad_c = ((0, 0), (0, mp - m))
    f_stk = jnp.concatenate([jnp.pad(fr, pad_r), jnp.pad(fi, pad_r)], axis=0)
    g_stk = jnp.concatenate([jnp.pad(gr, pad_c), jnp.pad(gi, pad_c)], axis=1)
    return f_stk.astype(jnp.bfloat16), g_stk.astype(jnp.bfloat16)


@functools.partial(jax.jit, static_argnames=("mp", "tl", "vmem_limit"))
def _global_filter_folded(x, f_stk, g_stk, w_blk, *, mp, tl, vmem_limit):
    """Lane-folded fallback: x (B,N,D) -> (N, B*D) slab, grid over lane tiles."""
    b, n, d = x.shape
    bd = b * d
    bdp = _round_up(bd, 128)
    w_const = (tl % d == 0)   # every lane tile sees identical W content

    x2 = jnp.transpose(x.astype(jnp.float32), (1, 0, 2)).reshape(n, bd)
    x2 = jnp.pad(x2, ((0, 0), (0, bdp - bd))).astype(jnp.bfloat16)

    const = pl.Buffered(1)    # constant-index blocks: no double-buffering
    if w_const:
        w_spec = pl.BlockSpec((2 * mp, tl), lambda j: (0, 0), pipeline_mode=const)
    else:
        w_spec = pl.BlockSpec((2 * mp, tl), lambda j: (0, j))

    out2 = pl.pallas_call(
        functools.partial(_global_filter_kernel, mp=mp),
        out_shape=jax.ShapeDtypeStruct((n, bdp), jnp.float32),
        grid=(bdp // tl,),
        in_specs=[
            pl.BlockSpec((n, tl), lambda j: (0, j)),                           # x
            pl.BlockSpec((2 * mp, n), lambda j: (0, 0), pipeline_mode=const),  # F
            pl.BlockSpec((n, 2 * mp), lambda j: (0, 0), pipeline_mode=const),  # G
            w_spec,                                                            # W
        ],
        out_specs=pl.BlockSpec((n, tl), lambda j: (0, j)),
        scratch_shapes=[pltpu.VMEM((2 * mp, tl), jnp.bfloat16)],
        compiler_params=pltpu.CompilerParams(
            dimension_semantics=("parallel",),
            vmem_limit_bytes=vmem_limit),
    )(x2, f_stk, g_stk, w_blk)

    out = out2[:, :bd].reshape(n, b, d)
    return jnp.transpose(out, (1, 0, 2))                   # (b, n, d) f32


@functools.partial(jax.jit, static_argnames=("mp", "tld", "vmem_limit"))
def _global_filter_direct(x, f_stk, g_stk, w_stk, *, mp, tld, vmem_limit):
    """Transpose-free path for d % 128 == 0: grid=(B, D//tld) on native layout."""
    b, n, d = x.shape
    x = x.astype(jnp.float32)

    const = pl.Buffered(1)
    if tld == d:
        w_spec = pl.BlockSpec((2 * mp, tld), lambda bi, j: (0, 0),
                              pipeline_mode=const)
    else:
        w_spec = pl.BlockSpec((2 * mp, tld), lambda bi, j: (0, j))

    return pl.pallas_call(
        functools.partial(_global_filter_kernel, mp=mp),
        out_shape=jax.ShapeDtypeStruct((b, n, d), jnp.float32),
        grid=(b, d // tld),
        in_specs=[
            pl.BlockSpec((None, n, tld), lambda bi, j: (bi, 0, j)),            # x
            pl.BlockSpec((2 * mp, n), lambda bi, j: (0, 0), pipeline_mode=const),  # F
            pl.BlockSpec((n, 2 * mp), lambda bi, j: (0, 0), pipeline_mode=const),  # G
            w_spec,                                                            # W
        ],
        out_specs=pl.BlockSpec((None, n, tld), lambda bi, j: (bi, 0, j)),
        scratch_shapes=[pltpu.VMEM((2 * mp, tld), jnp.bfloat16)],
        compiler_params=pltpu.CompilerParams(
            dimension_semantics=("parallel", "parallel"),
            vmem_limit_bytes=vmem_limit),
    )(x, f_stk, g_stk, w_stk)


class GlobalFilterPallas:
    """Non-causal GlobalFilter (rfft -> complex filter -> irfft), Pallas/TPU."""

    def __init__(self, seq_len: int, dim: int, causal: bool = False,
                 max_seq: int = 512, key=jax.random.PRNGKey(0)):
        if causal:
            # TODO(synk): causal branch requires MatrixFFT (not provided); only
            # the non-causal rfft/irfft path is implemented here.
            raise NotImplementedError("causal GlobalFilter not implemented")
        self.seq_len = seq_len
        self.dim = dim
        # nn.Parameter(torch.randn(seq_len, dim, 2) * 0.02), deterministic init.
        self.complex_weight = (
            jax.random.normal(key, (seq_len, dim, 2), dtype=jnp.float32) * 0.02)
        self._op_cache = {}   # n -> (F bf16 (2mp,n), G bf16 (n,2mp), W f32 (2mp,d), mp)
        self._w_cache = {}    # (n, kind, width) -> replicated/padded W block

    def _prepare(self, n: int):
        if n in self._op_cache:
            return self._op_cache[n]
        m = n // 2 + 1
        # bf16 scratch is sliced at row mp -> keep it sublane-pack (16) aligned;
        # bump to 128 (2mp % 256 == 0, full MXU tiles) only when nearly free.
        mp = _round_up(m, 16)
        mp128 = _round_up(m, 128)
        if mp128 * 10 <= mp * 11:
            mp = mp128
        f_stk, g_stk = _build_dft_operators(n, m, mp)

        # Slice / zero-pad the learned weight along frequency (matches F.pad in
        # the torch module), then pad to mp (padded bins are all-zero).
        cw = self.complex_weight
        if m > self.seq_len:
            cw = jnp.pad(cw, ((0, m - self.seq_len), (0, 0), (0, 0)))
        else:
            cw = cw[:m]
        wr = jnp.pad(cw[..., 0], ((0, mp - m), (0, 0)))      # (mp, d)
        wi = jnp.pad(cw[..., 1], ((0, mp - m), (0, 0)))      # (mp, d)
        w_stk = jnp.concatenate([wr, wi], axis=0)            # (2mp, d) f32

        self._op_cache[n] = (f_stk, g_stk, w_stk, mp)
        return self._op_cache[n]

    def _folded_weight(self, w_stk, n, b, tl, bdp):
        d = self.dim
        if tl % d == 0:
            key = (n, "tile", tl)
            if key not in self._w_cache:
                self._w_cache[key] = jnp.tile(w_stk, (1, tl // d))      # (2mp, tl)
        else:
            key = (n, "full", b, bdp)
            if key not in self._w_cache:
                w = jnp.tile(w_stk, (1, b))
                self._w_cache[key] = jnp.pad(w, ((0, 0), (0, bdp - b * d)))
        return self._w_cache[key]

    def __call__(self, x: jnp.ndarray) -> jnp.ndarray:
        b, n, d = x.shape
        assert d == self.dim
        f_stk, g_stk, w_stk, mp = self._prepare(n)

        cap = _vmem_capacity_bytes()
        budget = int(cap * 0.85)

        if d % 128 == 0:
            # Transpose-free path: grid over (batch, dim tiles) on native layout.
            cands = [t for t in (1024, 512, 256, 128) if d % t == 0]
            tld = cands[-1]
            for t in cands:
                wb = 1 if t == d else 2
                if _vmem_estimate(n, mp, t, 4, wb) <= budget:
                    tld = t
                    break
            while b * (d // tld) < 2 and tld >= 256:
                tld //= 2                       # keep both TCs / megacore busy
            wb = 1 if tld == d else 2
            vlim = _vmem_limit_bytes(_vmem_estimate(n, mp, tld, 4, wb), cap)
            return _global_filter_direct(x, f_stk, g_stk, w_stk,
                                         mp=mp, tld=tld, vmem_limit=vlim)

        # Fallback (d not lane-aligned): fold batch into the lane axis.
        bd = b * d
        bdp = _round_up(bd, 128)
        cands = [t for t in (1024, 512, 256, 128) if bdp % t == 0]
        tl = cands[-1]
        for t in cands:
            wb = 1 if t % d == 0 else 2
            if _vmem_estimate(n, mp, t, 2, wb) <= budget:
                tl = t
                break
        while bdp // tl < 2 and tl >= 256:
            tl //= 2
        wb = 1 if tl % d == 0 else 2
        vlim = _vmem_limit_bytes(_vmem_estimate(n, mp, tl, 2, wb), cap)
        w_blk = self._folded_weight(w_stk, n, b, tl, bdp)
        return _global_filter_folded(x, f_stk, g_stk, w_blk,
                                     mp=mp, tl=tl, vmem_limit=vlim)


def _reference(x, complex_weight, seq_len):
    """Pure-JAX reference mirroring the torch forward (non-causal)."""
    b, n, d = x.shape
    m = n // 2 + 1
    cw = complex_weight
    cw = cw[:m] if m <= seq_len else jnp.pad(
        cw, ((0, m - seq_len), (0, 0), (0, 0)))
    w = cw[..., 0] + 1j * cw[..., 1]
    xf = jnp.fft.rfft(x.astype(jnp.float32), axis=1, norm="ortho")
    return jnp.fft.irfft(xf * w[None], n=n, axis=1, norm="ortho")


if __name__ == "__main__":
    key = jax.random.PRNGKey(0)
    k_x1, k_w1, k_x2, k_w2 = jax.random.split(key, 4)

    # Case 1: small dim (d % 128 != 0) -> lane-folded fallback path.
    B, N, D = 2, 16, 32
    SEQ_LEN = N // 2 + 1          # 9 frequency bins stored in the parameter
    x1 = jax.random.normal(k_x1, (B, N, D), dtype=jnp.float32)
    mod1 = GlobalFilterPallas(seq_len=SEQ_LEN, dim=D, causal=False, key=k_w1)
    out1 = jax.block_until_ready(mod1(x1))
    ref1 = jax.block_until_ready(_reference(x1, mod1.complex_weight, SEQ_LEN))
    assert out1.shape == (B, N, D)
    assert jnp.allclose(out1, ref1, atol=1e-2, rtol=1e-2), (
        float(jnp.max(jnp.abs(out1 - ref1))))

    # Case 2: d % 128 == 0 -> transpose-free (B, N, D) path.
    B2, N2, D2 = 2, 16, 128
    x2 = jax.random.normal(k_x2, (B2, N2, D2), dtype=jnp.float32)
    mod2 = GlobalFilterPallas(seq_len=SEQ_LEN, dim=D2, causal=False, key=k_w2)
    out2 = jax.block_until_ready(mod2(x2))
    ref2 = jax.block_until_ready(_reference(x2, mod2.complex_weight, SEQ_LEN))
    assert out2.shape == (B2, N2, D2)
    assert jnp.allclose(out2, ref2, atol=1e-2, rtol=1e-2), (
        float(jnp.max(jnp.abs(out2 - ref2))))

    print("KERNEL_OK")
</pallas_src>

<mosaic_0001>
module attributes {stable_mosaic.version = 11 : i64} {
  func.func @_global_filter_kernel(%arg0: i32, %arg1: memref<16x128xbf16, #tpu.memory_space<vmem>>, %arg2: memref<32x16xbf16, #tpu.memory_space<vmem>>, %arg3: memref<16x32xbf16, #tpu.memory_space<vmem>>, %arg4: memref<32x128xf32, #tpu.memory_space<vmem>>, %arg5: memref<16x128xf32, #tpu.memory_space<vmem>>, %arg6: memref<32x128xbf16, #tpu.memory_space<vmem>>) attributes {dimension_semantics = [#tpu.dimension_semantics<parallel>], iteration_bounds = array<i64: 1>, scalar_prefetch = 0 : i64, scratch_operands = 1 : i64, tpu.core_type = #tpu.core_type<tc>, window_params = [{transform_indices = @transform_0, window_bounds = array<i64: 16, 128>}, {pipeline_mode = #tpu.pipeline_mode<synchronous>, transform_indices = @transform_1, window_bounds = array<i64: 32, 16>}, {pipeline_mode = #tpu.pipeline_mode<synchronous>, transform_indices = @transform_2, window_bounds = array<i64: 16, 32>}, {pipeline_mode = #tpu.pipeline_mode<synchronous>, transform_indices = @transform_3, window_bounds = array<i64: 32, 128>}, {transform_indices = @transform_4, window_bounds = array<i64: 16, 128>}]} {
    %c0 = arith.constant 0 : index
    %c0_0 = arith.constant 0 : index
    %0 = vector.load %arg1[%c0, %c0_0] : memref<16x128xbf16, #tpu.memory_space<vmem>>, vector<16x128xbf16>
    %c0_1 = arith.constant 0 : index
    %c0_2 = arith.constant 0 : index
    %1 = vector.load %arg2[%c0_1, %c0_2] : memref<32x16xbf16, #tpu.memory_space<vmem>>, vector<32x16xbf16>
    %cst = arith.constant dense<0.000000e+00> : vector<32x128xf32>
    %2 = tpu.matmul %1, %0, %cst {dimension_numbers = #tpu.dot_dimension_numbers<[1], [0], [0], [1], [0, 0, 1, 1], [], []>} : vector<32x16xbf16>, vector<16x128xbf16>, vector<32x128xf32> -> vector<32x128xf32>
    %3 = vector.extract_strided_slice %2 {offsets = [0, 0], sizes = [16, 128], strides = [1, 1]} : vector<32x128xf32> to vector<16x128xf32>
    %4 = vector.extract_strided_slice %2 {offsets = [16, 0], sizes = [16, 128], strides = [1, 1]} : vector<32x128xf32> to vector<16x128xf32>
    %c0_3 = arith.constant 0 : index
    %c0_4 = arith.constant 0 : index
    %5 = vector.load %arg4[%c0_3, %c0_4] : memref<32x128xf32, #tpu.memory_space<vmem>>, vector<32x128xf32>
    %6 = vector.extract_strided_slice %5 {offsets = [0, 0], sizes = [16, 128], strides = [1, 1]} : vector<32x128xf32> to vector<16x128xf32>
    %7 = vector.extract_strided_slice %5 {offsets = [16, 0], sizes = [16, 128], strides = [1, 1]} : vector<32x128xf32> to vector<16x128xf32>
    %8 = arith.mulf %3, %6 : vector<16x128xf32>
    %9 = arith.mulf %4, %7 : vector<16x128xf32>
    %10 = arith.subf %8, %9 : vector<16x128xf32>
    %11 = arith.truncf %10 : vector<16x128xf32> to vector<16x128xbf16>
    %c0_5 = arith.constant 0 : index
    %c0_6 = arith.constant 0 : index
    %12 = vector.load %arg6[%c0_5, %c0_6] : memref<32x128xbf16, #tpu.memory_space<vmem>>, vector<16x128xbf16>
    tpu.vector_store %arg6[%c0_5, %c0_6], %11 {strides = array<i32>} : memref<32x128xbf16, #tpu.memory_space<vmem>>, vector<16x128xbf16>,
    %13 = arith.mulf %3, %7 : vector<16x128xf32>
    %14 = arith.mulf %4, %6 : vector<16x128xf32>
    %15 = arith.addf %13, %14 : vector<16x128xf32>
    %16 = arith.truncf %15 : vector<16x128xf32> to vector<16x128xbf16>
    %c16 = arith.constant 16 : index
    %c0_7 = arith.constant 0 : index
    %17 = vector.load %arg6[%c16, %c0_7] : memref<32x128xbf16, #tpu.memory_space<vmem>>, vector<16x128xbf16>
    tpu.vector_store %arg6[%c16, %c0_7], %16 {strides = array<i32>} : memref<32x128xbf16, #tpu.memory_space<vmem>>, vector<16x128xbf16>,
    %c0_8 = arith.constant 0 : index
    %c0_9 = arith.constant 0 : index
    %18 = vector.load %arg3[%c0_8, %c0_9] : memref<16x32xbf16, #tpu.memory_space<vmem>>, vector<16x32xbf16>
    %c0_10 = arith.constant 0 : index
    %c0_11 = arith.constant 0 : index
    %19 = vector.load %arg6[%c0_10, %c0_11] : memref<32x128xbf16, #tpu.memory_space<vmem>>, vector<32x128xbf16>
    %cst_12 = arith.constant dense<0.000000e+00> : vector<16x128xf32>
    %20 = tpu.matmul %18, %19, %cst_12 {dimension_numbers = #tpu.dot_dimension_numbers<[1], [0], [0], [1], [0, 0, 1, 1], [], []>} : vector<16x32xbf16>, vector<32x128xbf16>, vector<16x128xf32> -> vector<16x128xf32>
    %c0_13 = arith.constant 0 : index
    %c0_14 = arith.constant 0 : index
    %21 = vector.load %arg5[%c0_13, %c0_14] : memref<16x128xf32, #tpu.memory_space<vmem>>, vector<16x128xf32>
    tpu.vector_store %arg5[%c0_13, %c0_14], %20 {strides = array<i32>} : memref<16x128xf32, #tpu.memory_space<vmem>>, vector<16x128xf32>,
    return
  }
  func.func @transform_0(%arg0: i32) -> (i32, i32) {
    %c0_i32 = arith.constant 0 : i32
    %c0_i32_0 = arith.constant 0 : i32
    return %c0_i32, %arg0 : i32, i32
  }
  func.func @transform_1(%arg0: i32) -> (i32, i32) {
    %c0_i32 = arith.constant 0 : i32
    %c0_i32_0 = arith.constant 0 : i32
    %c0_i32_1 = arith.constant 0 : i32
    return %c0_i32, %c0_i32_0 : i32, i32
  }
  func.func @transform_2(%arg0: i32) -> (i32, i32) {
    %c0_i32 = arith.constant 0 : i32
    %c0_i32_0 = arith.constant 0 : i32
    %c0_i32_1 = arith.constant 0 : i32
    return %c0_i32, %c0_i32_0 : i32, i32
  }
  func.func @transform_3(%arg0: i32) -> (i32, i32) {
    %c0_i32 = arith.constant 0 : i32
    %c0_i32_0 = arith.constant 0 : i32
    %c0_i32_1 = arith.constant 0 : i32
    return %c0_i32, %c0_i32_0 : i32, i32
  }
  func.func @transform_4(%arg0: i32) -> (i32, i32) {
    %c0_i32 = arith.constant 0 : i32
    %c0_i32_0 = arith.constant 0 : i32
    return %c0_i32, %arg0 : i32, i32
  }
}

</mosaic_0001>

<bundles_post_ra>
// kernel: _global_filter_folded.1
= control target key start
LH: loop header
LB: loop body
LE: loop exit
PB: predicated region body
PF: predicated region fallthrough
CT: control target
= control target key end

     0   :  { %vm40_vm0 = vcmask 130048   ;;  %v209_v3 = vmov 0.0   ;;  %vm210_vm1 = vmmov 0   ;;  %vm125_vm2 = vcmask 261120   ;;  %s266_s0 = inlined_call_operand.vmem [shape: bf16[16,128], index: 0, kind: input, shape index: {}]   ;;  %s267_s1 = inlined_call_operand.vmem [shape: bf16[32,16], index: 1, kind: input, shape index: {}]   ;;  %s268_s2 = inlined_call_operand.vmem [shape: bf16[16,32], index: 2, kind: input, shape index: {}]   ;;  %s269_s3 = inlined_call_operand.vmem [shape: f32[32,128], index: 3, kind: input, shape index: {}]   ;;  %s270_s4 = inlined_call_operand.vmem [shape: f32[16,128], index: 4, kind: output, shape index: {}]  }
   0x1   :  { %v205_v0 = vld [vmem:[%s266_s0] sm:$0xff]   ;;  %v207_v2 = vld [vmem:[%s267_s1 + $0x8] sm:$0xff]   ;;  %195 = vmatprep.subr.bf16.mxu1 %v209_v3  ;;  %199 = vmatprep.mubr.msk.bf16.mxu1 %vm210_vm1, %v209_v3  ;;  %v98_v5 = vld [vmem:[%s269_s3 + $0x10] sm:$0xff] }
   0x2   :  { %v206_v1 = vld [vmem:[%s267_s1] sm:$0xff]   ;;  %189 = vmatprep.subr.bf16.mxu0 %v205_v0  ;;  %v97_v7 = vld [vmem:[%s269_s3 + $0x8] sm:$0xff]  ;;  %v99_v8 = vld [vmem:[%s269_s3 + $0x18] sm:$0xff] }
   0x3   :  { %190 = vmatpush3.bf16.msra.mxu0 %v205_v0  ;;  %191 = vmatprep.mubr.msk.bf16.mxu0 %vm40_vm0, %v206_v1  ;;  %v96_v4 = vld [vmem:[%s269_s3] sm:$0xff] }
   0x4   :  { %v208_v26 = vld [vmem:[%s268_s2] sm:$0xff]  }
   0x6   :  { %192 = vmatmul.mubr.msk.bf16.vlgmr.msra.gmra.mrb[0].mxu0 %vm40_vm0, %v207_v2 }
  0xd9   :  { %v193_v6 = vpop.f32.mrb[0].mxu0 }
  0xda   :  { %v102_v9 = vmul.f32 %v193_v6, %v98_v5  ;;  %v110_v10 = vmul.f32 %v193_v6, %v96_v4  ;;  %v81_v11 = vpop.f32.mrb[1].mxu0 }
  0xdb   :  { %v100_v12 = vmul.f32 %v96_v4, %v81_v11  ;;  %v108_v13 = vmul.f32 %v98_v5, %v81_v11  ;;  %v194_v14 = vpop.f32.mrb[2].mxu0 }
  0xdc   :  { %v84_v15 = vpop.f32.mrb[3].mxu0  ;;  %v103_v16 = vmul.f32 %v194_v14, %v99_v8  ;;  %v111_v17 = vmul.f32 %v194_v14, %v97_v7 }
  0xdd   :  { %v112_v18 = vadd.f32 %v110_v10, %v108_v13  ;;  %v101_v19 = vmul.f32 %v97_v7, %v84_v15  ;;  %v109_v20 = vmul.f32 %v99_v8, %v84_v15  ;;  %v104_v21 = vsub.f32 %v100_v12, %v102_v9 }
  0xdf   :  { %v105_v22 = vsub.f32 %v101_v19, %v103_v16  ;;  %v113_v23 = vadd.f32 %v111_v17, %v109_v20 }
  0xe1   :  { %v106_v24 = vpack.c.bf16 %v105_v22, %v104_v21  ;;  %v114_v25 = vpack.c.bf16 %v113_v23, %v112_v18 }
  0xe3   :  { %196 = vmatpush3.bf16.msra.mxu1 %v106_v24 }
  0xe4   :  { %197 = vmatprep.subr.bf16.mxu1 %v209_v3 }
  0xe7   :  { %198 = vmatpush3.bf16.msra.mxu1 %v114_v25 }
  0xea   :  { %200 = vmatmul.mubr.msk.bf16.vlgmr.msra.gmra.mrb[0].mxu1 %vm125_vm2, %v208_v26 }
 0x1bd   :  { %v163_v27 = vpop.f32.mrb[0].mxu1 }
 0x1be   :  { %170 = vst [vmem:[%s270_s4] sm:$0xff] %v163_v27  ;;  %v201_v28 = vpop.f32.mrb[1].mxu1 }
 0x1bf   :  { %v166_v29 = vpop.f32.mrb[2].mxu1 }
 0x1c0   :  { %171 = vst [vmem:[%s270_s4 + $0x8] sm:$0xff] %v166_v29  ;;  %v202_v30 = vpop.f32.mrb[3].mxu1 }

</bundles_post_ra>
